<compile_context>
chip_gen: v7x
topology: tpu7x:2x2x1
jax: 0.10.0
libtpu: 0.0.40
codegen_flags: <defaults>
</compile_context>

<pallas_src>
import jax
import jax.numpy as jnp
from jax.experimental import pallas as pl
from jax.experimental.pallas import tpu as pltpu

BN_EPS = 1e-5


def gated_fusion_kernel(concat_ref, w1_ref, gamma_ref, beta_ref, w2_ref, b2_ref,
                        out_ref):
    x = concat_ref[...]                      # (B, 2D) f32, layout [face | voice]
    D = x.shape[1] // 2

    # ---- attention MLP hot path ----
    # Linear 1 (single MXU dot; b1 omitted: exactly cancelled by BN mean subtraction).
    h = jnp.dot(x, w1_ref[...], preferred_element_type=jnp.float32)   # (B, M)

    # BatchNorm1d, training mode: biased batch stats; affine folded to scale/shift.
    mean = jnp.mean(h, axis=0, keepdims=True)                          # (1, M)
    var = jnp.maximum(jnp.mean(h * h, axis=0, keepdims=True) - mean * mean, 0.0)
    scale = gamma_ref[...] * jax.lax.rsqrt(var + BN_EPS)               # (1, M) EUP rsqrt
    shift = beta_ref[...] - mean * scale                               # (1, M)

    # ReLU; Dropout(p=0) is the identity.
    h_act = jnp.maximum(h * scale + shift, 0.0)                        # (B, M)

    # Linear 2 + sigmoid gate.
    att = jax.nn.sigmoid(
        jnp.dot(h_act, w2_ref[...], preferred_element_type=jnp.float32)
        + b2_ref[...])                                                 # (B, D)

    # ---- gated fusion ----
    th = jnp.tanh(x)                         # (B, 2D) = [tanh(face) | tanh(voice)]
    face_emb = th[:, :D]
    voice_emb = th[:, D:]
    fused = voice_emb + att * (face_emb - voice_emb)                   # (B, D)

    # Single lane-dense store: [face_emb | voice_emb | fused]  -> (B, 3D)
    out_ref[...] = jnp.concatenate([th, fused], axis=1)


def gated_fusion(voice_input, face_input, params):
    """voice_input, face_input: (B, D) float32. Returns (voice_emb, face_emb, fused_emb)."""
    B, D = voice_input.shape
    w1, gamma, beta, w2, b2 = (params["w1"], params["gamma"], params["beta"],
                               params["w2"], params["b2"])
    M = w1.shape[0]
    assert w1.shape == (M, 2 * D) and w2.shape == (D, M), "emb_dim_out must equal embed_dim_in"

    # Build concat([face, voice]) once on the XLA side; pre-transpose the Linear
    # weights (out,in) -> (in,out) so the kernel does plain  x @ W.
    concat = jnp.concatenate(
        [face_input.astype(jnp.float32), voice_input.astype(jnp.float32)], axis=1)
    w1_t = w1.T                              # (2D, M)
    w2_t = w2.T                              # (M, D)

    vspec = pl.BlockSpec(memory_space=pltpu.MemorySpace.VMEM)
    packed = pl.pallas_call(
        gated_fusion_kernel,
        out_shape=jax.ShapeDtypeStruct((B, 3 * D), jnp.float32),
        in_specs=[vspec] * 6,
        out_specs=vspec,
    )(concat, w1_t, gamma.reshape(1, M), beta.reshape(1, M), w2_t, b2.reshape(1, D))

    face_emb = packed[:, :D]
    voice_emb = packed[:, D:2 * D]
    fused = packed[:, 2 * D:]
    return voice_emb, face_emb, fused


def init_params(key, embed_dim_in, mid_att_dim, emb_dim_out):
    """Deterministic synthetic parameters (PyTorch-default-style uniform init)."""
    k1, k2, k3, k4 = jax.random.split(key, 4)
    fan_in1 = 2 * embed_dim_in
    bound1 = 1.0 / jnp.sqrt(fan_in1)
    fan_in2 = mid_att_dim
    bound2 = 1.0 / jnp.sqrt(fan_in2)
    return {
        "w1": jax.random.uniform(k1, (mid_att_dim, fan_in1), jnp.float32, -bound1, bound1),
        "b1": jax.random.uniform(k2, (mid_att_dim,), jnp.float32, -bound1, bound1),
        "gamma": jnp.ones((mid_att_dim,), jnp.float32),   # BatchNorm1d default weight
        "beta": jnp.zeros((mid_att_dim,), jnp.float32),   # BatchNorm1d default bias
        "w2": jax.random.uniform(k3, (emb_dim_out, mid_att_dim), jnp.float32, -bound2, bound2),
        "b2": jax.random.uniform(k4, (emb_dim_out,), jnp.float32, -bound2, bound2),
    }


def reference(voice, face, params):
    """Plain-JAX reference mirroring the PyTorch forward (training-mode BN, Dropout p=0).
    Keeps b1 and the two-pass variance so it exercises the kernel's exact-cancellation
    and one-pass-variance rewrites."""
    concat = jnp.concatenate([face, voice], axis=1)
    h = concat @ params["w1"].T + params["b1"]
    mean = jnp.mean(h, axis=0, keepdims=True)
    var = jnp.mean((h - mean) ** 2, axis=0, keepdims=True)
    h = (h - mean) / jnp.sqrt(var + BN_EPS) * params["gamma"] + params["beta"]
    h = jnp.maximum(h, 0.0)
    att = jax.nn.sigmoid(h @ params["w2"].T + params["b2"])
    face_emb = jnp.tanh(face)
    voice_emb = jnp.tanh(voice)
    fused = face_emb * att + (1.0 - att) * voice_emb
    return voice_emb, face_emb, fused


if __name__ == "__main__":
    B = 8
    embed_dim_in = 32
    mid_att_dim = 64
    emb_dim_out = 32   # must equal embed_dim_in for the gating broadcast

    key = jax.random.PRNGKey(0)
    k_v, k_f, k_p = jax.random.split(key, 3)
    voice = jax.random.normal(k_v, (B, embed_dim_in), jnp.float32)
    face = jax.random.normal(k_f, (B, embed_dim_in), jnp.float32)
    params = init_params(k_p, embed_dim_in, mid_att_dim, emb_dim_out)

    voice_emb, face_emb, fused = gated_fusion(voice, face, params)
    jax.block_until_ready((voice_emb, face_emb, fused))

    ref_v, ref_f, ref_fused = reference(voice, face, params)
    assert jnp.allclose(voice_emb, ref_v, atol=1e-5)
    assert jnp.allclose(face_emb, ref_f, atol=1e-5)
    assert jnp.allclose(fused, ref_fused, atol=1e-5)

    print("KERNEL_OK")
</pallas_src>

<mosaic_0001>
module attributes {stable_mosaic.version = 11 : i64} {
  func.func @gated_fusion_kernel(%arg0: memref<8x64xf32, #tpu.memory_space<vmem>>, %arg1: memref<64x64xf32, #tpu.memory_space<vmem>>, %arg2: memref<1x64xf32, #tpu.memory_space<vmem>>, %arg3: memref<1x64xf32, #tpu.memory_space<vmem>>, %arg4: memref<64x32xf32, #tpu.memory_space<vmem>>, %arg5: memref<1x32xf32, #tpu.memory_space<vmem>>, %arg6: memref<8x96xf32, #tpu.memory_space<vmem>>) attributes {dimension_semantics = [], scalar_prefetch = 0 : i64, scratch_operands = 0 : i64, tpu.core_type = #tpu.core_type<tc>} {
    %c0 = arith.constant 0 : index
    %c0_0 = arith.constant 0 : index
    %0 = vector.load %arg0[%c0, %c0_0] : memref<8x64xf32, #tpu.memory_space<vmem>>, vector<8x64xf32>
    %c0_1 = arith.constant 0 : index
    %c0_2 = arith.constant 0 : index
    %1 = vector.load %arg1[%c0_1, %c0_2] : memref<64x64xf32, #tpu.memory_space<vmem>>, vector<64x64xf32>
    %cst = arith.constant dense<0.000000e+00> : vector<8x64xf32>
    %2 = tpu.matmul %0, %1, %cst {dimension_numbers = #tpu.dot_dimension_numbers<[1], [0], [0], [1], [0, 0, 1, 1], [], []>} : vector<8x64xf32>, vector<64x64xf32>, vector<8x64xf32> -> vector<8x64xf32>
    %cst_3 = arith.constant dense<0.000000e+00> : vector<64xf32>
    %3 = vector.multi_reduction <add>, %2, %cst_3 [0] : vector<8x64xf32> to vector<64xf32>
    %4 = vector.shape_cast %3 : vector<64xf32> to vector<1x64xf32>
    %cst_4 = arith.constant 8.000000e+00 : f32
    %5 = vector.broadcast %cst_4 : f32 to vector<1x64xf32>
    %6 = arith.divf %4, %5 : vector<1x64xf32>
    %7 = arith.mulf %2, %2 : vector<8x64xf32>
    %cst_5 = arith.constant dense<0.000000e+00> : vector<64xf32>
    %8 = vector.multi_reduction <add>, %7, %cst_5 [0] : vector<8x64xf32> to vector<64xf32>
    %9 = vector.shape_cast %8 : vector<64xf32> to vector<1x64xf32>
    %cst_6 = arith.constant 8.000000e+00 : f32
    %10 = vector.broadcast %cst_6 : f32 to vector<1x64xf32>
    %11 = arith.divf %9, %10 : vector<1x64xf32>
    %12 = arith.mulf %6, %6 : vector<1x64xf32>
    %13 = arith.subf %11, %12 : vector<1x64xf32>
    %cst_7 = arith.constant 0.000000e+00 : f32
    %14 = vector.broadcast %cst_7 : f32 to vector<1x64xf32>
    %15 = arith.maximumf %13, %14 : vector<1x64xf32>
    %c0_8 = arith.constant 0 : index
    %c0_9 = arith.constant 0 : index
    %16 = vector.load %arg2[%c0_8, %c0_9] : memref<1x64xf32, #tpu.memory_space<vmem>>, vector<1x64xf32>
    %cst_10 = arith.constant 9.99999974E-6 : f32
    %17 = vector.broadcast %cst_10 : f32 to vector<1x64xf32>
    %18 = arith.addf %15, %17 : vector<1x64xf32>
    %19 = math.rsqrt %18 : vector<1x64xf32>
    %20 = arith.mulf %16, %19 : vector<1x64xf32>
    %c0_11 = arith.constant 0 : index
    %c0_12 = arith.constant 0 : index
    %21 = vector.load %arg3[%c0_11, %c0_12] : memref<1x64xf32, #tpu.memory_space<vmem>>, vector<1x64xf32>
    %22 = arith.mulf %6, %20 : vector<1x64xf32>
    %23 = arith.subf %21, %22 : vector<1x64xf32>
    %24 = vector.broadcast %20 : vector<1x64xf32> to vector<8x64xf32>
    %25 = arith.mulf %2, %24 : vector<8x64xf32>
    %26 = vector.broadcast %23 : vector<1x64xf32> to vector<8x64xf32>
    %27 = arith.addf %25, %26 : vector<8x64xf32>
    %cst_13 = arith.constant 0.000000e+00 : f32
    %28 = vector.broadcast %cst_13 : f32 to vector<8x64xf32>
    %29 = arith.maximumf %27, %28 : vector<8x64xf32>
    %c0_14 = arith.constant 0 : index
    %c0_15 = arith.constant 0 : index
    %30 = vector.load %arg4[%c0_14, %c0_15] : memref<64x32xf32, #tpu.memory_space<vmem>>, vector<64x32xf32>
    %cst_16 = arith.constant dense<0.000000e+00> : vector<8x32xf32>
    %31 = tpu.matmul %29, %30, %cst_16 {dimension_numbers = #tpu.dot_dimension_numbers<[1], [0], [0], [1], [0, 0, 1, 1], [], []>} : vector<8x64xf32>, vector<64x32xf32>, vector<8x32xf32> -> vector<8x32xf32>
    %c0_17 = arith.constant 0 : index
    %c0_18 = arith.constant 0 : index
    %32 = vector.load %arg5[%c0_17, %c0_18] : memref<1x32xf32, #tpu.memory_space<vmem>>, vector<1x32xf32>
    %33 = vector.broadcast %32 : vector<1x32xf32> to vector<8x32xf32>
    %34 = arith.addf %31, %33 : vector<8x32xf32>
    %35 = arith.negf %34 : vector<8x32xf32>
    %36 = math.exp %35 : vector<8x32xf32>
    %cst_19 = arith.constant 1.000000e+00 : f32
    %37 = vector.broadcast %cst_19 : f32 to vector<8x32xf32>
    %38 = arith.addf %37, %36 : vector<8x32xf32>
    %39 = arith.divf %37, %38 : vector<8x32xf32>
    %40 = math.tanh %0 : vector<8x64xf32>
    %41 = vector.extract_strided_slice %40 {offsets = [0, 0], sizes = [8, 32], strides = [1, 1]} : vector<8x64xf32> to vector<8x32xf32>
    %42 = vector.extract_strided_slice %40 {offsets = [0, 32], sizes = [8, 32], strides = [1, 1]} : vector<8x64xf32> to vector<8x32xf32>
    %43 = arith.subf %41, %42 : vector<8x32xf32>
    %44 = arith.mulf %39, %43 : vector<8x32xf32>
    %45 = arith.addf %42, %44 : vector<8x32xf32>
    %46 = tpu.concatenate %40, %45 in 1 : vector<8x64xf32>, vector<8x32xf32> -> vector<8x96xf32>
    %c0_20 = arith.constant 0 : index
    %c0_21 = arith.constant 0 : index
    %47 = vector.load %arg6[%c0_20, %c0_21] : memref<8x96xf32, #tpu.memory_space<vmem>>, vector<8x96xf32>
    tpu.vector_store %arg6[%c0_20, %c0_21], %46 {strides = array<i32>} : memref<8x96xf32, #tpu.memory_space<vmem>>, vector<8x96xf32>,
    return
  }
}

</mosaic_0001>

<bundles_post_ra>
// kernel: tpu_custom_call.1
= control target key start
LH: loop header
LB: loop body
LE: loop exit
PB: predicated region body
PF: predicated region fallthrough
CT: control target
= control target key end

     0   :  { %v399_v3 = vmov 0.0|0.0   ;;  %vm400_vm0 = vmmov 0   ;;  %v401_v6 = vmov 0.0   ;;  %s523_s0 = inlined_call_operand.vmem [shape: f32[8,64], index: 0, kind: input, shape index: {}]   ;;  %s524_s1 = inlined_call_operand.vmem [shape: f32[64,64], index: 1, kind: input, shape index: {}]   ;;  %s525_s2 = inlined_call_operand.vmem [shape: f32[1,64], index: 2, kind: input, shape index: {}]   ;;  %s526_s3 = inlined_call_operand.vmem [shape: f32[1,64], index: 3, kind: input, shape index: {}]   ;;  %s527_s4 = inlined_call_operand.vmem [shape: f32[64,32], index: 4, kind: input, shape index: {}]   ;;  %s528_s5 = inlined_call_operand.vmem [shape: f32[1,32], index: 5, kind: input, shape index: {}]   ;;  %s529_s6 = inlined_call_operand.hbm [shape: f32[8,96], index: 6, kind: output, shape index: {}]  }
   0x1   :  { %v25_v0 = vld [vmem:[%s524_s1] sm:$0xff]  ;;  %v26_v1 = vld [vmem:[%s524_s1 + $0x8] sm:$0xff]  ;;  %v27_v2 = vld [vmem:[%s524_s1 + $0x10] sm:$0xff]  ;;  %337 = vmatprep.subr.bf16.mxu0 %v399_v3  ;;  %315 = vmatprep.mubr.msk.f32.mxu0 %vm400_vm0, %v401_v6 }
   0x2   :  { %v338_v4 = vpack.c.bf16 %v26_v1, %v25_v0  ;;  %v28_v5 = vld [vmem:[%s524_s1 + $0x18] sm:$0xff]  ;;  %349 = vmatprep.subr.bf16.mxu1 %v399_v3  ;;  %334 = vmatprep.mubr.msk.f32.mxu1 %vm400_vm0, %v401_v6 }
   0x3   :  { %v341_v7 = vpack.c.bf16 %v28_v5, %v27_v2 }
   0x4   :  { %339 = vmatpush3.bf16.msra.mxu0 %v338_v4 }
   0x5   :  { %11 = vsyncpa [#allocation3], 0  ;;  %340 = vmatprep.subr.bf16.mxu0 %v399_v3  ;;  %v29_v8 = vld [vmem:[%s524_s1 + $0x20] sm:$0xff]  ;;  %v30_v9 = vld [vmem:[%s524_s1 + $0x28] sm:$0xff]  ;;  %vm33_vm1 = vcmask 523264   ;;  %s402_s29 = smov 96   ;;  %v136_v51 = vlaneseq }
   0x6   :  { %v344_v10 = vpack.c.bf16 %v30_v9, %v29_v8  ;;  %v31_v11 = vld [vmem:[%s524_s1 + $0x30] sm:$0xff]  ;;  %v32_v12 = vld [vmem:[%s524_s1 + $0x38] sm:$0xff]  ;;  %v24_v14 = vld [vmem:[%s523_s0] sm:$0xff]  ;;  %vm261_vm2 = vcmask 785408  }
   0x7   :  { %v347_v13 = vpack.c.bf16 %v32_v12, %v31_v11  ;;  %v150_v15 = vld [vmem:[%s527_s4] sm:$0xff]  ;;  %v151_v16 = vld [vmem:[%s527_s4 + $0x8] sm:$0xff]  ;;  %v152_v18 = vld [vmem:[%s527_s4 + $0x10] sm:$0xff]  ;;  %367 = vtanh.f32 %v24_v14  ;;  %v137_v52 = vshrl.u32 %v136_v51, 7 }
   0x8   :  { %342 = vmatpush3.bf16.msra.mxu0 %v341_v7  ;;  %v350_v17 = vpack.c.bf16 %v151_v16, %v150_v15  ;;  %v153_v19 = vld [vmem:[%s527_s4 + $0x18] sm:$0xff]  ;;  %v154_v21 = vld [vmem:[%s527_s4 + $0x20] sm:$0xff]  ;;  %v155_v22 = vld [vmem:[%s527_s4 + $0x28] sm:$0xff] }
   0x9   :  { %343 = vmatprep.subr.bf16.mxu0 %v399_v3  ;;  %v353_v20 = vpack.c.bf16 %v153_v19, %v152_v18  ;;  %v356_v23 = vpack.c.bf16 %v155_v22, %v154_v21  ;;  %v156_v24 = vld [vmem:[%s527_s4 + $0x30] sm:$0xff]  ;;  %v157_v25 = vld [vmem:[%s527_s4 + $0x38] sm:$0xff]  ;;  %v128_v53 = vld [vmem:[%s525_s2] sm:$0x1]  ;;  %v138_v54 = vsub.s32 0, %v137_v52  ;;  %s403_s2 = smov 32  }
   0xa   :  { %351 = vmatpush3.bf16.msra.mxu1 %v350_v17  ;;  %v359_v26 = vpack.c.bf16 %v157_v25, %v156_v24  ;;  %v132_v57 = vld [vmem:[%s526_s3] sm:$0x1]  ;;  %s404_s3 = smov [#allocation2]  }
   0xb   :  { %352 = vmatprep.subr.bf16.mxu1 %v399_v3  ;;  %v278_v1 = vld [vmem:[%s528_s5] ss:$0 sm:$0xff]  ;;  %s269_s5 = sshll.u32 %s404_s3, 4  ;;  %s270_s5 = int_to_ptr.vmem [resolvable:$true] %s269_s5 }
   0xc   :  { %345 = vmatpush3.bf16.msra.mxu0 %v344_v10  ;;  %s375_s11 = scalar_lea.vmem %s270_s5, 128  ;;  %p380_p1 = scmp.lt.s32.totalorder %s270_s5, %s270_s5 }
   0xd   :  { %346 = vmatprep.subr.bf16.mxu0 %v399_v3  ;;  %p376_p0 = scmp.ne.s32.totalorder %s270_s5, %s375_s11  ;;  %p381_p2 = scmp.lt.s32.totalorder %s375_s11, %s375_s11 }
   0xe   :  { %354 = vmatpush3.bf16.msra.mxu1 %v353_v20 }
   0xf   :  { %355 = vmatprep.subr.bf16.mxu1 %v399_v3  ;;  %p382_p3 = por %p381_p2, %p380_p1 }
  0x10   :  { %348 = vmatpush3.bf16.msra.mxu0 %v347_v13 }
  0x11   :  { %v492_v27 = vpop.eup %367  ;;  %p383_p4 = pnand %p382_p3, %p376_p0 }
  0x12   :  { %357 = vmatpush3.bf16.msra.mxu1 %v356_v23  ;;  %246 = vrot.lane.b32.xlu0 %v492_v27, %s402_s29 }
  0x13   :  { %316 = vmatmul.mubr.msk.f32.vlgmr.msra.gmra.mrb[0].mxu0 %vm33_vm1, %v24_v14  ;;  %358 = vmatprep.subr.bf16.mxu1 %v399_v3 }
  0x16   :  { %360 = vmatpush3.bf16.msra.mxu1 %v359_v26 }
  0x84   :  { %v247_v8 = vpop.permute.xlu0 %246 }
  0x85   :  { %v249_v9 = vsub.f32 %v492_v27, %v247_v8 }
  0xe6   :  { %v103_v28 = vpop.f32.mrb[0].mxu0 }
  0xe7   :  { %v107_v29 = vsel %vm33_vm1, %v103_v28, 0.0  ;;  %v116_v30 = vmul.f32 %v103_v28, %v103_v28  ;;  %v317_v31 = vpop.f32.mrb[1].mxu0 }
  0xe8   :  { %v108_v32 = vrot.slane %v107_v29, 4 }
  0xe9   :  { %v117_v33 = vsel %vm33_vm1, %v116_v30, 0.0 }
  0xea   :  { %v109_v34 = vadd.f32 %v108_v32, %v107_v29  ;;  %v118_v35 = vrot.slane %v117_v33, 4 }
  0xec   :  { %v110_v36 = vrot.slane %v109_v34, 2  ;;  %v119_v37 = vadd.f32 %v118_v35, %v117_v33 }
  0xee   :  { %v111_v38 = vadd.f32 %v110_v36, %v109_v34  ;;  %v120_v39 = vrot.slane %v119_v37, 2 }
  0xf0   :  { %v112_v40 = vrot.slane %v111_v38, 1  ;;  %v121_v41 = vadd.f32 %v120_v39, %v119_v37 }
  0xf2   :  { %v113_v42 = vadd.f32 %v112_v40, %v111_v38  ;;  %v122_v43 = vrot.slane %v121_v41, 1 }
  0xf4   :  { %v115_v44 = vmul.f32 0.125, %v113_v42  ;;  %v123_v45 = vadd.f32 %v122_v43, %v121_v41 }
  0xf6   :  { %v124_v46 = vmul.f32 0.125, %v123_v45  ;;  %v125_v47 = vmul.f32 %v115_v44, %v115_v44 }
  0xf8   :  { %v126_v48 = vsub.f32 %v124_v46, %v125_v47 }
  0xfa   :  { %v127_v49 = vmax.f32 %v126_v48, 0.0 }
  0xfc   :  { %v129_v50 = vadd.f32 1e-05, %v127_v49 }
  0xfe   :  { %369 = vrsqrt.f32 %v129_v50 }
 0x108   :  { %v370_v55 = vpop.eup %369 }
 0x109   :  { %v131_v56 = vmul.f32 %v370_v55, %v128_v53 }
 0x10b   :  { %v133_v58 = vmul.f32 %v131_v56, %v115_v44  ;;  %v139_v59 = vrot.slane %v131_v56, %v138_v54 }
 0x10d   :  { %v134_v60 = vsub.f32 %v132_v57, %v133_v58  ;;  %v141_v61 = vmul.f32 %v139_v59, %v103_v28 }
 0x10f   :  { %v146_v62 = vrot.slane %v134_v60, %v138_v54 }
 0x111   :  { %v148_v63 = vadd.f32 %v146_v62, %v141_v61 }
 0x113   :  { %v149_v0 = vmax.f32 %v148_v63, 0.0 }
 0x115   :  { %335 = vmatmul.mubr.msk.f32.vlgmr.msra.gmra.mrb[0].mxu1 %vm33_vm1, %v149_v0 }
 0x1e8   :  { %v234_v2 = vpop.f32.mrb[0].mxu1 }
 0x1e9   :  { %v235_v3 = vadd.f32 %v278_v1, %v234_v2  ;;  %v336_v4 = vpop.f32.mrb[1].mxu1 }
 0x1eb   :  { %v280_v5 = vmul.f32 -1.442695, %v235_v3 }
 0x1ed   :  { %371 = vpow2.f32 %v280_v5 }
 0x1f7   :  { %v372_v6 = vpop.eup %371 }
 0x1f8   :  { %v241_v7 = vadd.f32 1.0, %v372_v6 }
 0x1fa   :  { %373 = vrcp.f32 %v241_v7 }
 0x204   :  { %v374_v10 = vpop.eup %373 }
 0x205   :  { %v250_v11 = vmul.f32 %v374_v10, %v249_v9 }
 0x207   :  { %252 = vrot.lane.b32.xlu0 %v250_v11, %s403_s2 }
 0x279   :  { %v253_v12 = vpop.permute.xlu0 %252 }
 0x27a   :  { %v255_v13 = vadd.f32 %v492_v27, %v253_v12 }
 0x27c   :  { %257 = vrot.lane.b32.xlu1 %v255_v13, %s403_s2 }
 0x2ee   :  { %v258_v14 = vpop.permute.xlu1 %257 }
 0x2ef   :  { %v260_v15 = vsel %vm33_vm1, %v492_v27, %v258_v14 }
 0x2f0   :  { %262 = vst.msk [vmem:[#allocation2] sm:$0xff] %vm261_vm2, %v260_v15 }
 0x2f1   :  { %386 = shalt.err (!%p383_p4)
}
 0x2f2   :  { %s387_s14 = scalar_lea.hbm %s529_s6, 128 }
 0x2f3   :  { %p388_p5 = scmp.ne.s32.totalorder %s529_s6, %s387_s14  ;;  %p391_p6 = scmp.lt.u32.totalorder %s387_s14, %s529_s6 }
 0x2f5   :  { %p393_p7 = pnand %p391_p6, %p388_p5 }
 0x2f7   :  { %396 = shalt.err (!%p393_p7)
}
 0x2f8   :  { %272 = dma.vmem_to_hbm [thread:$0]  %s270_s5, 128, %s529_s6, [#allocation3]  }
 0x2f9   :  { %397 = dma.done.wait [#allocation3], 128  }
 0x2fa   :  { %398 = vsyncadd [#allocation3], 4294967168 }
 0x2fb   :  { %276 = vsyncpa [#allocation3], 1 }

</bundles_post_ra>
